<compile_context>
chip_gen: v5e
topology: v5e:2x2
jax: 0.10.0
libtpu: 0.0.40
codegen_flags: <defaults>
</compile_context>

<pallas_src>
import jax
import jax.numpy as jnp
from jax.experimental import pallas as pl
from jax.experimental.pallas import tpu as pltpu

EPS = 1e-5
LANE = 128
SUBLANE = 8


def _round_up(x, m):
    return (x + m - 1) // m * m


def _input_net_kernel(x_ref, w1_ref, w2_ref, w3_ref, b_ref, out_ref):
    """One grid step = one SubNet: (BN-folded) Linear+ReLU x3.

    Shapes seen by the kernel (leading subnet dim squeezed away):
      x_ref  : [B_pad, IN_PAD]
      w1_ref : [IN_PAD, H_PAD]      (BatchNorm folded in)
      w2_ref : [H_PAD, H_PAD]
      w3_ref : [H_PAD, H_PAD]
      b_ref  : [1, 3*H_PAD]         (b1 | b2 | b3, lane-aligned slices)
      out_ref: [B_pad, H_PAD]
    """
    h = out_ref.shape[-1]
    x = x_ref[...]
    y = jnp.maximum(
        jnp.dot(x, w1_ref[...], preferred_element_type=jnp.float32)
        + b_ref[:, 0 * h:1 * h], 0.0)
    y = jnp.maximum(
        jnp.dot(y, w2_ref[...], preferred_element_type=jnp.float32)
        + b_ref[:, 1 * h:2 * h], 0.0)
    y = jnp.maximum(
        jnp.dot(y, w3_ref[...], preferred_element_type=jnp.float32)
        + b_ref[:, 2 * h:3 * h], 0.0)
    out_ref[...] = y.astype(out_ref.dtype)


def init_subnet_params(key, in_size, hidden_size):
    """Deterministic synthetic parameters for one SubNet (PyTorch-equivalent layout)."""
    ks = jax.random.split(key, 8)
    scale = 0.05
    return {
        # BatchNorm1d affine + running stats.
        "gamma": jnp.ones((in_size,), jnp.float32),
        "beta": jnp.zeros((in_size,), jnp.float32),
        "mean": jax.random.normal(ks[0], (in_size,), jnp.float32) * 0.1,
        "var": jnp.abs(jax.random.normal(ks[1], (in_size,), jnp.float32)) * 0.5 + 0.5,
        # Linear layers, weights stored pre-transposed as [in, out] (y = x @ W + b).
        "w1": jax.random.normal(ks[2], (in_size, hidden_size), jnp.float32) * scale,
        "b1": jax.random.normal(ks[3], (hidden_size,), jnp.float32) * scale,
        "w2": jax.random.normal(ks[4], (hidden_size, hidden_size), jnp.float32) * scale,
        "b2": jax.random.normal(ks[5], (hidden_size,), jnp.float32) * scale,
        "w3": jax.random.normal(ks[6], (hidden_size, hidden_size), jnp.float32) * scale,
        "b3": jax.random.normal(ks[7], (hidden_size,), jnp.float32) * scale,
    }


def pack_input_net_params(subnet_params, in_sizes, hidden):
    """One-time algebraic fold (BN -> W1/b1) + zero-pad + stack for the fused kernel."""
    in_pad = _round_up(max(in_sizes), LANE)
    h_pad = _round_up(hidden, LANE)
    w1s, w2s, w3s, bs = [], [], [], []
    for p, n_in in zip(subnet_params, in_sizes):
        bn_scale = p["gamma"] * jax.lax.rsqrt(p["var"] + EPS)          # [in]
        bn_shift = p["beta"] - p["mean"] * bn_scale                    # [in]
        w1f = bn_scale[:, None] * p["w1"]                              # [in, H]
        b1f = p["b1"] + bn_shift @ p["w1"]                             # [H]

        w1s.append(jnp.zeros((in_pad, h_pad), jnp.float32)
                   .at[:n_in, :hidden].set(w1f))
        w2s.append(jnp.zeros((h_pad, h_pad), jnp.float32)
                   .at[:hidden, :hidden].set(p["w2"]))
        w3s.append(jnp.zeros((h_pad, h_pad), jnp.float32)
                   .at[:hidden, :hidden].set(p["w3"]))

        b = jnp.zeros((1, 3 * h_pad), jnp.float32)
        b = b.at[0, 0 * h_pad:0 * h_pad + hidden].set(b1f)
        b = b.at[0, 1 * h_pad:1 * h_pad + hidden].set(p["b2"])
        b = b.at[0, 2 * h_pad:2 * h_pad + hidden].set(p["b3"])
        bs.append(b)

    return {
        "w1": jnp.stack(w1s, axis=0),     # [3, in_pad, h_pad]
        "w2": jnp.stack(w2s, axis=0),     # [3, h_pad, h_pad]
        "w3": jnp.stack(w3s, axis=0),     # [3, h_pad, h_pad]
        "bias": jnp.stack(bs, axis=0),    # [3, 1, 3*h_pad]
        "hidden": hidden,
        "in_pad": in_pad,
        "h_pad": h_pad,
    }


def input_net_forward(audio_x, video_x, text_x, packed):
    """InputNet.forward: 3 SubNets fused into one pallas_call; output = concat(dim=0)."""
    xs = (audio_x, video_x, text_x)
    B = audio_x.shape[0]
    assert all(x.shape[0] == B for x in xs), "equal batch sizes expected"

    in_pad, h_pad, hidden = packed["in_pad"], packed["h_pad"], packed["hidden"]
    b_pad = _round_up(B, SUBLANE)

    # Zero-pad each modality to the common lane-dense feature width and stack.
    x_stacked = jnp.stack(
        [jnp.pad(x, ((0, b_pad - B), (0, in_pad - x.shape[1]))) for x in xs],
        axis=0)                                             # [3, B_pad, IN_PAD]

    out_padded = pl.pallas_call(
        _input_net_kernel,
        out_shape=jax.ShapeDtypeStruct((3 * b_pad, h_pad), jnp.float32),
        grid_spec=pltpu.PrefetchScalarGridSpec(
            num_scalar_prefetch=0,
            grid=(3,),
            in_specs=[
                pl.BlockSpec((pl.Squeezed(), b_pad, in_pad), lambda i: (i, 0, 0)),
                pl.BlockSpec((pl.Squeezed(), in_pad, h_pad), lambda i: (i, 0, 0)),
                pl.BlockSpec((pl.Squeezed(), h_pad, h_pad), lambda i: (i, 0, 0)),
                pl.BlockSpec((pl.Squeezed(), h_pad, h_pad), lambda i: (i, 0, 0)),
                pl.BlockSpec((pl.Squeezed(), 1, 3 * h_pad), lambda i: (i, 0, 0)),
            ],
            # Each grid step writes its own (B_pad, H_PAD) slab of the stacked output
            # -> this IS the torch.cat(dim=0), no extra copy.
            out_specs=pl.BlockSpec((b_pad, h_pad), lambda i: (i, 0)),
        ),
        compiler_params=pltpu.CompilerParams(
            dimension_semantics=("parallel",),   # 3 independent subnets (megacore on v7x)
        ),
    )(x_stacked, packed["w1"], packed["w2"], packed["w3"], packed["bias"])

    # Trim batch / hidden padding in the wrapper.
    out = out_padded.reshape(3, b_pad, h_pad)[:, :B, :hidden]
    return out.reshape(3 * B, hidden)


def _reference_subnet(x, p):
    """Pure-JAX reference: un-folded BN (eval) + Linear/ReLU chain."""
    normed = (x - p["mean"]) * jax.lax.rsqrt(p["var"] + EPS) * p["gamma"] + p["beta"]
    y1 = jnp.maximum(normed @ p["w1"] + p["b1"], 0.0)
    y2 = jnp.maximum(y1 @ p["w2"] + p["b2"], 0.0)
    y3 = jnp.maximum(y2 @ p["w3"] + p["b3"], 0.0)
    return y3


if __name__ == "__main__":
    # Small synthetic config: input_dims = (audio_in, video_in, text_in),
    # args.edge_input_dim = OUT_DIM.
    AUDIO_IN, VIDEO_IN, TEXT_IN = 16, 32, 64
    OUT_DIM = 32
    BATCH = 8

    root = jax.random.PRNGKey(0)
    k_a, k_v, k_t, k_pa, k_pv, k_pt = jax.random.split(root, 6)

    audio_x = jax.random.normal(k_a, (BATCH, AUDIO_IN), jnp.float32)
    video_x = jax.random.normal(k_v, (BATCH, VIDEO_IN), jnp.float32)
    text_x = jax.random.normal(k_t, (BATCH, TEXT_IN), jnp.float32)

    raw_params = [
        init_subnet_params(k_pa, AUDIO_IN, OUT_DIM),
        init_subnet_params(k_pv, VIDEO_IN, OUT_DIM),
        init_subnet_params(k_pt, TEXT_IN, OUT_DIM),
    ]
    packed = pack_input_net_params(raw_params, (AUDIO_IN, VIDEO_IN, TEXT_IN), OUT_DIM)

    out = input_net_forward(audio_x, video_x, text_x, packed)
    out = jax.block_until_ready(out)
    assert out.shape == (3 * BATCH, OUT_DIM), out.shape

    # Correctness check against the un-folded pure-JAX reference (validates the BN fold).
    ref = jnp.concatenate(
        [_reference_subnet(audio_x, raw_params[0]),
         _reference_subnet(video_x, raw_params[1]),
         _reference_subnet(text_x, raw_params[2])], axis=0)
    max_err = float(jnp.max(jnp.abs(out - ref)))
    assert jnp.allclose(out, ref, atol=1e-4, rtol=1e-4), max_err

    print("KERNEL_OK")
</pallas_src>

<mosaic_0001>
module attributes {stable_mosaic.version = 11 : i64} {
  func.func @_input_net_kernel(%arg0: i32, %arg1: memref<1x8x128xf32, #tpu.memory_space<vmem>>, %arg2: memref<1x128x128xf32, #tpu.memory_space<vmem>>, %arg3: memref<1x128x128xf32, #tpu.memory_space<vmem>>, %arg4: memref<1x128x128xf32, #tpu.memory_space<vmem>>, %arg5: memref<1x1x384xf32, #tpu.memory_space<vmem>>, %arg6: memref<8x128xf32, #tpu.memory_space<vmem>>) attributes {dimension_semantics = [#tpu.dimension_semantics<parallel>], iteration_bounds = array<i64: 3>, scalar_prefetch = 0 : i64, scratch_operands = 0 : i64, tpu.core_type = #tpu.core_type<tc>, window_params = [{transform_indices = @transform_0, window_bounds = array<i64: 1, 8, 128>}, {transform_indices = @transform_1, window_bounds = array<i64: 1, 128, 128>}, {transform_indices = @transform_2, window_bounds = array<i64: 1, 128, 128>}, {transform_indices = @transform_3, window_bounds = array<i64: 1, 128, 128>}, {transform_indices = @transform_4, window_bounds = array<i64: 1, 1, 384>}, {transform_indices = @transform_5, window_bounds = array<i64: 8, 128>}]} {
    %c0 = arith.constant 0 : index
    %c0_0 = arith.constant 0 : index
    %c0_1 = arith.constant 0 : index
    %0 = vector.load %arg1[%c0, %c0_0, %c0_1] : memref<1x8x128xf32, #tpu.memory_space<vmem>>, vector<1x8x128xf32>
    %1 = vector.shape_cast %0 : vector<1x8x128xf32> to vector<8x128xf32>
    %c0_2 = arith.constant 0 : index
    %c0_3 = arith.constant 0 : index
    %c0_4 = arith.constant 0 : index
    %2 = vector.load %arg2[%c0_2, %c0_3, %c0_4] : memref<1x128x128xf32, #tpu.memory_space<vmem>>, vector<1x128x128xf32>
    %3 = vector.shape_cast %2 : vector<1x128x128xf32> to vector<128x128xf32>
    %cst = arith.constant dense<0.000000e+00> : vector<8x128xf32>
    %4 = tpu.matmul %1, %3, %cst {dimension_numbers = #tpu.dot_dimension_numbers<[1], [0], [0], [1], [0, 0, 1, 1], [], []>} : vector<8x128xf32>, vector<128x128xf32>, vector<8x128xf32> -> vector<8x128xf32>
    %c0_5 = arith.constant 0 : index
    %c0_6 = arith.constant 0 : index
    %c0_7 = arith.constant 0 : index
    %5 = vector.load %arg5[%c0_5, %c0_6, %c0_7] : memref<1x1x384xf32, #tpu.memory_space<vmem>>, vector<1x1x128xf32>
    %6 = vector.shape_cast %5 : vector<1x1x128xf32> to vector<1x128xf32>
    %7 = vector.broadcast %6 : vector<1x128xf32> to vector<8x128xf32>
    %8 = arith.addf %4, %7 : vector<8x128xf32>
    %cst_8 = arith.constant 0.000000e+00 : f32
    %9 = vector.broadcast %cst_8 : f32 to vector<8x128xf32>
    %10 = arith.maximumf %8, %9 : vector<8x128xf32>
    %c0_9 = arith.constant 0 : index
    %c0_10 = arith.constant 0 : index
    %c0_11 = arith.constant 0 : index
    %11 = vector.load %arg3[%c0_9, %c0_10, %c0_11] : memref<1x128x128xf32, #tpu.memory_space<vmem>>, vector<1x128x128xf32>
    %12 = vector.shape_cast %11 : vector<1x128x128xf32> to vector<128x128xf32>
    %cst_12 = arith.constant dense<0.000000e+00> : vector<8x128xf32>
    %13 = tpu.matmul %10, %12, %cst_12 {dimension_numbers = #tpu.dot_dimension_numbers<[1], [0], [0], [1], [0, 0, 1, 1], [], []>} : vector<8x128xf32>, vector<128x128xf32>, vector<8x128xf32> -> vector<8x128xf32>
    %c0_13 = arith.constant 0 : index
    %c0_14 = arith.constant 0 : index
    %c128 = arith.constant 128 : index
    %14 = vector.load %arg5[%c0_13, %c0_14, %c128] : memref<1x1x384xf32, #tpu.memory_space<vmem>>, vector<1x1x128xf32>
    %15 = vector.shape_cast %14 : vector<1x1x128xf32> to vector<1x128xf32>
    %16 = vector.broadcast %15 : vector<1x128xf32> to vector<8x128xf32>
    %17 = arith.addf %13, %16 : vector<8x128xf32>
    %cst_15 = arith.constant 0.000000e+00 : f32
    %18 = vector.broadcast %cst_15 : f32 to vector<8x128xf32>
    %19 = arith.maximumf %17, %18 : vector<8x128xf32>
    %c0_16 = arith.constant 0 : index
    %c0_17 = arith.constant 0 : index
    %c0_18 = arith.constant 0 : index
    %20 = vector.load %arg4[%c0_16, %c0_17, %c0_18] : memref<1x128x128xf32, #tpu.memory_space<vmem>>, vector<1x128x128xf32>
    %21 = vector.shape_cast %20 : vector<1x128x128xf32> to vector<128x128xf32>
    %cst_19 = arith.constant dense<0.000000e+00> : vector<8x128xf32>
    %22 = tpu.matmul %19, %21, %cst_19 {dimension_numbers = #tpu.dot_dimension_numbers<[1], [0], [0], [1], [0, 0, 1, 1], [], []>} : vector<8x128xf32>, vector<128x128xf32>, vector<8x128xf32> -> vector<8x128xf32>
    %c0_20 = arith.constant 0 : index
    %c0_21 = arith.constant 0 : index
    %c256 = arith.constant 256 : index
    %23 = vector.load %arg5[%c0_20, %c0_21, %c256] : memref<1x1x384xf32, #tpu.memory_space<vmem>>, vector<1x1x128xf32>
    %24 = vector.shape_cast %23 : vector<1x1x128xf32> to vector<1x128xf32>
    %25 = vector.broadcast %24 : vector<1x128xf32> to vector<8x128xf32>
    %26 = arith.addf %22, %25 : vector<8x128xf32>
    %cst_22 = arith.constant 0.000000e+00 : f32
    %27 = vector.broadcast %cst_22 : f32 to vector<8x128xf32>
    %28 = arith.maximumf %26, %27 : vector<8x128xf32>
    %c0_23 = arith.constant 0 : index
    %c0_24 = arith.constant 0 : index
    %29 = vector.load %arg6[%c0_23, %c0_24] : memref<8x128xf32, #tpu.memory_space<vmem>>, vector<8x128xf32>
    tpu.vector_store %arg6[%c0_23, %c0_24], %28 {strides = array<i32>} : memref<8x128xf32, #tpu.memory_space<vmem>>, vector<8x128xf32>,
    return
  }
  func.func @transform_0(%arg0: i32) -> (i32, i32, i32) {
    %c0_i32 = arith.constant 0 : i32
    %c0_i32_0 = arith.constant 0 : i32
    %c0_i32_1 = arith.constant 0 : i32
    return %arg0, %c0_i32, %c0_i32_0 : i32, i32, i32
  }
  func.func @transform_1(%arg0: i32) -> (i32, i32, i32) {
    %c0_i32 = arith.constant 0 : i32
    %c0_i32_0 = arith.constant 0 : i32
    %c0_i32_1 = arith.constant 0 : i32
    return %arg0, %c0_i32, %c0_i32_0 : i32, i32, i32
  }
  func.func @transform_2(%arg0: i32) -> (i32, i32, i32) {
    %c0_i32 = arith.constant 0 : i32
    %c0_i32_0 = arith.constant 0 : i32
    %c0_i32_1 = arith.constant 0 : i32
    return %arg0, %c0_i32, %c0_i32_0 : i32, i32, i32
  }
  func.func @transform_3(%arg0: i32) -> (i32, i32, i32) {
    %c0_i32 = arith.constant 0 : i32
    %c0_i32_0 = arith.constant 0 : i32
    %c0_i32_1 = arith.constant 0 : i32
    return %arg0, %c0_i32, %c0_i32_0 : i32, i32, i32
  }
  func.func @transform_4(%arg0: i32) -> (i32, i32, i32) {
    %c0_i32 = arith.constant 0 : i32
    %c0_i32_0 = arith.constant 0 : i32
    %c0_i32_1 = arith.constant 0 : i32
    return %arg0, %c0_i32, %c0_i32_0 : i32, i32, i32
  }
  func.func @transform_5(%arg0: i32) -> (i32, i32) {
    %c0_i32 = arith.constant 0 : i32
    %c0_i32_0 = arith.constant 0 : i32
    return %arg0, %c0_i32 : i32, i32
  }
}

</mosaic_0001>

<bundles_post_ra>
// kernel: tpu_custom_call.1
= control target key start
LH: loop header
LB: loop body
LE: loop exit
PB: predicated region body
PF: predicated region fallthrough
CT: control target
= control target key end

     0   :  { %s1355_s0 = inlined_call_operand.hbm [shape: f32[3,8,128], index: 0, kind: input, shape index: {}]   ;;  %s1356_s1 = inlined_call_operand.hbm [shape: f32[3,128,128], index: 1, kind: input, shape index: {}]   ;;  %s1357_s2 = inlined_call_operand.hbm [shape: f32[3,128,128], index: 2, kind: input, shape index: {}]   ;;  %s1358_s3 = inlined_call_operand.hbm [shape: f32[3,128,128], index: 3, kind: input, shape index: {}]   ;;  %s1359_s4 = inlined_call_operand.hbm [shape: f32[3,1,384], index: 4, kind: input, shape index: {}]   ;;  %s1360_s5 = inlined_call_operand.hbm [shape: f32[24,128], index: 5, kind: output, shape index: {}]  }
   0x1   :  { %1373 = sst [smem:[#allocation22_spill]] %s1356_s1 }
   0x2   :  { %1374 = sst [smem:[#allocation23_spill]] %s1358_s3 }
   0x3   :  { %1375 = sst [smem:[#allocation24_spill]] %s1360_s5 }
   0x4   :  { %10 = vsyncpa [#allocation3], 0 }
   0x5   :  { %12 = vsyncpa [#allocation3 + $0x1], 0 }
   0x6   :  { %13 = vsyncpa [#allocation6], 0 }
   0x7   :  { %15 = vsyncpa [#allocation6 + $0x1], 0 }
   0x8   :  { %16 = vsyncpa [#allocation9], 0 }
   0x9   :  { %18 = vsyncpa [#allocation9 + $0x1], 0 }
   0xa   :  { %19 = vsyncpa [#allocation4], 0 }
   0xb   :  { %21 = vsyncpa [#allocation4 + $0x1], 0  ;;  %s1057_s18 = smov 0   ;;  %s1059_s19 = smov 0  }
   0xc   :  { %s1061_s20 = smov 0   ;;  %s1063_s21 = smov 0  }
   0xd LB: > { %1376 = sst [smem:[#allocation16_spill]] %s1011_s18  ;;  %s1078_s22 = sadd.s32 4294967295, %s1023_s21   ;;  %s1023_s21 = sphi %s1063_s21, %s1397_s21   ;;  %s1019_s20 = sphi %s1061_s20, %s1399_s20   ;;  %s1015_s19 = sphi %s1059_s19, %s1401_s19   ;;  %s1011_s18 = sphi %s1057_s18, %s1400_s18  }
   0xe   : > { %1377 = sst [smem:[#allocation17_spill]] %s1019_s20  ;;  %s698_s23 = sadd.s32 4294967294, %s1023_s21  }
   0xf   : > { %s1082_s24 = sadd.s32 1, %s1023_s21   ;;  %s34_s25 = sadd.s32 1, %s1019_s20 }
  0x10   : > { %1378 = sst [smem:[#allocation18_spill]] %s1082_s24  ;;  %s31_s26 = ssub.s32 %s1023_s21, %s1082_s24 }
  0x11   : > { %p41_p0 = scmp.ne.s32.totalorder %s1019_s20, %s1015_s19  ;;  %p32_p1 = scmp.eq.s32.totalorder %s31_s26, 0 }
  0x12   : > { %p42_p2 = scmp.eq.s32.totalorder %s1023_s21, 0  ;;  %p47_p3 = scmp.ne.s32.totalorder %s1015_s19, %s1011_s18 }
  0x13   : > { %p48_p4 = scmp.eq.s32.totalorder %s1078_s22, 0  ;;  %p175_p7 = scmp.eq.s32.totalorder %s1078_s22, 2 }
  0x14   : > { %s1094_s27 = scalar_select %p32_p1, %s1019_s20, %s34_s25  }
  0x15   : > { %p43_p5 = por %p42_p2, %p41_p0  ;;  %p1096_p6 = por %p48_p4, %p47_p3 }
  0x16   : > { %1379 = sst [smem:[#allocation19_spill]] %s1094_s27  ;;  %p181_p8 = scmp.eq.s32.totalorder %s698_s23, 2 }
  0x17   : > { %p760_p9 = scmp.lt.s32.totalorder %s1023_s21, 3  ;;  %p1102_p10 = por %p175_p7, %p41_p0 }
  0x18   : > { %p1106_p11 = por %p181_p8, %p47_p3  ;;  %s1111_s6 = sand.u32 1, %s1019_s20  }
  0x19   : > { %s1381_s29 = scalar_select %p1102_p10, 1, 0 }
  0x1a   : > { %s1383_s30 = scalar_select %p1106_p11, 1, 0 }
  0x1b   : > { %1382 = sst [smem:[#allocation20_spill]] %s1381_s29  ;;  %p1113_p12 = pnand %p760_p9, %p43_p5 }
  0x1c   : > { %1384 = sst [smem:[#allocation21_spill]] %s1383_s30  ;;  %s1361_s8 = sand.u32 1, %s1023_s21  }
  0x1d   : > { %s1119_s9 = sshll.u32 %s1111_s6, 7  ;;  %s1122_s10 = sshll.u32 %s1023_s21, 7 }
  0x1e   : > { %s1386_s1 = sld [smem:[#allocation22_spill]]  ;;  %s224_s14 = scalar_lea.vmem [#allocation5], %s1119_s9 }
  0x1f   : > { %s232_s15 = sshll.u32 %s224_s14, 4  ;;  %p712_p13 = scmp.ge.s32.totalorder %s1023_s21, 1  ;;  %s233_s15 = int_to_ptr.vmem [resolvable:$true] %s232_s15 }
  0x20   : > { %s1132_s17 = scalar_lea.sflag [#allocation6], %s1361_s8  ;;  %p1136_p1 = pneg %p1113_p12 }
  0x24   : > { %s229_s13 = scalar_lea.hbm %s1386_s1, %s1122_s10 }
  0x25   : > { %s230_s16 = sshll.u32 %s229_s13, 4  ;;  %s806_s13 = scalar_lea.hbm %s1386_s1, 384  ;;  %s231_s16 = int_to_ptr.hbm [resolvable:$true] %s230_s16 }
  0x26   : > { %s799_s23 = sshra.s32 %s231_s16, 4  ;;  %s800_s23 = int_to_ptr.hbm [resolvable:$true] %s799_s23 }
  0x27   : > { %s801_s25 = scalar_lea.hbm %s800_s23, 128  ;;  %p807_p4 = scmp.lt.s32.totalorder %s800_s23, %s1386_s1 }
  0x28   : > { %p802_p0 = scmp.ne.s32.totalorder %s800_s23, %s801_s25  ;;  %p808_p5 = scmp.lt.s32.totalorder %s806_s13, %s801_s25 }
  0x2a   : > { %p804_p2 = pnand %p1136_p1, %p802_p0  ;;  %p809_p7 = por %p808_p5, %p807_p4 }
  0x2c   : > { %p805_p3 = pneg %p804_p2 }
  0x2e   : > { %p810_p8 = pnand %p809_p7, %p805_p3 }
  0x30   : > { %813 = shalt.err (!%p810_p8)
}
  0x31   : > { %s1366_s27 = smov 128   ;;  %s1371_s20 = smov 8  }
  0x32   : > { %746 = dma.hbm_to_vmem [thread:$0]  (!%p1113_p12), %s231_s16, 2048, %s233_s15, %s1132_s17, %s1366_s27, %s1366_s27, %s1371_s20  }
  0x33   : > { %p303_p9 = scmp.lt.s32.totalorder %s1023_s21, 4  ;;  %s1388_s3 = sld [smem:[#allocation23_spill]] }
  0x34   : > { %s268_s13 = scalar_lea.vmem [#allocation8], %s1119_s9  ;;  %s1390_s1 = sand.u32 1, %s1023_s21  }
  0x35   : > { %p1161_p0 = pnand %p712_p13, %p303_p9  ;;  %s276_s14 = sshll.u32 %s268_s13, 4  ;;  %s277_s14 = int_to_ptr.vmem [resolvable:$true] %s276_s14 }
  0x36   : > { %s1168_s24 = scalar_lea.sflag [#allocation9], %s1390_s1 }
  0x39   : > { %s273_s25 = scalar_lea.hbm %s1388_s3, %s1122_s10  ;;  %s836_s23 = scalar_lea.hbm %s1388_s3, 384 }
  0x3a   : > { %s274_s12 = sshll.u32 %s273_s25, 4  ;;  %s275_s12 = int_to_ptr.hbm [resolvable:$true] %s274_s12 }
  0x3b   : > { %s829_s30 = sshra.s32 %s275_s12, 4  ;;  %s830_s30 = int_to_ptr.hbm [resolvable:$true] %s829_s30 }
  0x3c   : > { %s831_s15 = scalar_lea.hbm %s830_s30, 128  ;;  %p837_p13 = scmp.lt.s32.totalorder %s830_s30, %s1388_s3 }
  0x3d   : > { %p832_p2 = scmp.ne.s32.totalorder %s830_s30, %s831_s15  ;;  %p838_p5 = scmp.lt.s32.totalorder %s836_s23, %s831_s15 }
  0x3f   : > { %p834_p3 = pnand %p832_p2, %p1136_p1  ;;  %p839_p7 = por %p838_p5, %p837_p13 }
  0x41   : > { %p835_p4 = pneg %p834_p3 }
  0x43   : > { %p840_p8 = pnand %p839_p7, %p835_p4 }
  0x45   : > { %843 = shalt.err (!%p840_p8)
}
  0x46   : > { %s1391_s1 = smov 128   ;;  %s701_s13 = sshll.u32 %s1111_s6, 3 }
  0x47   : > { %752 = dma.hbm_to_vmem [thread:$0]  (!%p1113_p12), %s275_s12, 2048, %s277_s14, %s1168_s24, %s1391_s1, %s1391_s1, %s1371_s20  }
  0x48   : > { %s702_s16 = sshll.u32 %s1023_s21, 3  ;;  %s205_s23 = scalar_lea.vmem [#allocation2], %s701_s13 }
  0x49   : > { %s209_s30 = scalar_lea.hbm %s1355_s0, %s702_s16  ;;  %s213_s25 = sshll.u32 %s205_s23, 4  ;;  %s214_s25 = int_to_ptr.vmem [resolvable:$true] %s213_s25 }
  0x4a   : > { %s211_s15 = sshll.u32 %s209_s30, 4  ;;  %s202_s3 = scalar_lea.sflag [#allocation3], %s1111_s6  ;;  %s212_s15 = int_to_ptr.hbm [resolvable:$true] %s211_s15 }
  0x4b   : > { %s859_s18 = sshra.s32 %s212_s15, 4  ;;  %s866_s20 = scalar_lea.hbm %s1355_s0, 24  ;;  %s860_s18 = int_to_ptr.hbm [resolvable:$true] %s859_s18 }
  0x4c   : > { %s861_s29 = scalar_lea.hbm %s860_s18, 8  ;;  %p867_p4 = scmp.lt.s32.totalorder %s860_s18, %s1355_s0 }
  0x4d   : > { %p862_p9 = scmp.ne.s32.totalorder %s860_s18, %s861_s29  ;;  %p868_p13 = scmp.lt.s32.totalorder %s866_s20, %s861_s29 }
  0x4f   : > { %p864_p2 = pnand %p862_p9, %p1136_p1  ;;  %p869_p5 = por %p868_p13, %p867_p4 }
  0x51   : > { %p865_p3 = pneg %p864_p2 }
  0x53   : > { %p870_p7 = pnand %p869_p5, %p865_p3 }
  0x55   : > { %873 = shalt.err (!%p870_p7)
}
  0x56   : > { %743 = dma.hbm_to_vmem [thread:$0]  (!%p1113_p12), %s212_s15, 128, %s214_s25, %s202_s3  }
  0x57   : > { %s251_s27 = scalar_lea.hbm %s1357_s2, %s1122_s10  ;;  %s246_s23 = scalar_lea.vmem [#allocation7], %s1119_s9 }
  0x58   : > { %s252_s30 = sshll.u32 %s251_s27, 4  ;;  %s254_s12 = sshll.u32 %s246_s23, 4  ;;  %s253_s30 = int_to_ptr.hbm [resolvable:$true] %s252_s30  ;;  %s255_s12 = int_to_ptr.vmem [resolvable:$true] %s254_s12 }
  0x59   : > { %s889_s5 = sshra.s32 %s253_s30, 4  ;;  %s896_s3 = scalar_lea.hbm %s1357_s2, 384  ;;  %s890_s5 = int_to_ptr.hbm [resolvable:$true] %s889_s5 }
  0x5a   : > { %s891_s18 = scalar_lea.hbm %s890_s5, 128  ;;  %p897_p3 = scmp.lt.s32.totalorder %s890_s5, %s1357_s2 }
  0x5b   : > { %p892_p8 = scmp.ne.s32.totalorder %s890_s5, %s891_s18  ;;  %p898_p4 = scmp.lt.s32.totalorder %s896_s3, %s891_s18 }
  0x5d   : > { %p894_p9 = pnand %p892_p8, %p1136_p1  ;;  %p899_p13 = por %p898_p4, %p897_p3 }
  0x5f   : > { %p895_p2 = pneg %p894_p9 }
  0x61   : > { %p900_p5 = pnand %p899_p13, %p895_p2 }
  0x63   : > { %903 = shalt.err (!%p900_p5)
}
  0x64   : > { %s1392_s9 = smov 8   ;;  %s725_s10 = smul.u32 3, %s1111_s6 }
  0x65   : > { %749 = dma.hbm_to_vmem [thread:$0]  (!%p1113_p12), %s253_s30, 2048, %s255_s12, %s1132_s17, %s1391_s1, %s1391_s1, %s1392_s9  }
  0x66   : > { %s726_s14 = smul.u32 3, %s1023_s21  ;;  %s290_s27 = scalar_lea.vmem [#allocation10], %s725_s10 }
  0x67   : > { %s298_s23 = sshll.u32 %s290_s27, 4  ;;  %s926_s6 = scalar_lea.hbm %s1359_s4, 9  ;;  %s299_s23 = int_to_ptr.vmem [resolvable:$true] %s298_s23 }
  0x68   : > { %s294_s16 = scalar_lea.hbm %s1359_s4, %s726_s14 }
  0x69   : > { %s296_s5 = sshll.u32 %s294_s16, 4  ;;  %s297_s5 = int_to_ptr.hbm [resolvable:$true] %s296_s5 }
  0x6a   : > { %s919_s18 = sshra.s32 %s297_s5, 4  ;;  %s920_s18 = int_to_ptr.hbm [resolvable:$true] %s919_s18 }
  0x6b   : > { %s921_s20 = scalar_lea.hbm %s920_s18, 3  ;;  %p927_p2 = scmp.lt.s32.totalorder %s920_s18, %s1359_s4 }
  0x6c   : > { %p922_p7 = scmp.ne.s32.totalorder %s920_s18, %s921_s20  ;;  %p928_p3 = scmp.lt.s32.totalorder %s926_s6, %s921_s20 }
  0x6e   : > { %p924_p8 = pnand %p922_p7, %p1136_p1  ;;  %p929_p4 = por %p928_p3, %p927_p2 }
  0x70   : > { %p925_p9 = pneg %p924_p8 }
  0x72   : > { %p930_p13 = pnand %p929_p4, %p925_p9 }
  0x74   : > { %933 = shalt.err (!%p930_p13)
}
  0x75   : > { %755 = dma.hbm_to_vmem [thread:$0]  (!%p1113_p12), %s297_s5, 48, %s299_s23, %s1168_s24  }
  0x76   : > { %307 = sbr.rel (%p1161_p0) target bundleno = 561 (0x231), region = 40  ;;  %s1238_s26 = sand.u32 (!%p1161_p0), 1, %s1015_s19  }
  0x77   : > { %s713_s12 = sshll.u32 (!%p1161_p0), %s1238_s26, 3  ;;  %s310_s3 = scalar_lea.sflag (!%p1161_p0), [#allocation3], %s1238_s26 }
  0x78   : > { %s1244_s15 = scalar_lea.vmem (!%p1161_p0), [#allocation2], %s713_s12 }
  0x7b   : > { %994 = dma.done.wait (%p1096_p6), %s310_s3, 128  }
  0x7c   : > { %996 = vsyncadd (%p1096_p6), %s310_s3, 4294967168  ;;  %s319_s24 = sand.u32 1, %s1078_s22   ;;  %s714_s7 = sshll.u32 %s1238_s26, 7 }
  0x7d   : > { %s320_s11 = scalar_lea.sflag [#allocation6], %s319_s24  ;;  %s1252_s25 = scalar_lea.vmem [#allocation5], %s714_s7 }
  0x7e   : > { %998 = dma.done.wait (%p1096_p6), %s320_s11, 4096  }
  0x7f   : > { %1000 = vsyncadd (%p1096_p6), %s320_s11, 4294963200  ;;  %s1258_s9 = scalar_lea.vmem [#allocation7], %s714_s7  ;;  %s340_s10 = scalar_lea.sflag [#allocation9], %s319_s24 }
  0x80   : > { %s1260_s14 = scalar_lea.vmem [#allocation8], %s714_s7 }
  0x81   : > { %1002 = dma.done.wait (%p1096_p6), %s340_s10, 2096  }
  0x82   : > { %1004 = vsyncadd (%p1096_p6), %s340_s10, 4294965200  ;;  %v417_v0 = vld [vmem:[%s1252_s25 + $0x78] sm:$0xff]  ;;  %v416_v1 = vld [vmem:[%s1252_s25 + $0x70] sm:$0xff]  ;;  %s727_s28 = smul.u32 3, %s1238_s26  ;;  %s719_s13 = sshll.u32 %s1078_s22, 3 }
  0x83   : > { %422 = vmatpush.msra.mxu0 %v417_v0  ;;  %v415_v2 = vld [vmem:[%s1252_s25 + $0x68] sm:$0xff]  ;;  %v414_v3 = vld [vmem:[%s1252_s25 + $0x60] sm:$0xff]  ;;  %v458_v4 = vld [vmem:[%s1258_s9 + $0x78] sm:$0xff]  ;;  %s1393_s23 = sld [smem:[#allocation24_spill]]  ;;  %s400_s20 = scalar_lea.vmem [#allocation11], %s713_s12 }
  0x84   : > { %v413_v5 = vld [vmem:[%s1252_s25 + $0x58] sm:$0xff]  ;;  %463 = vmatpush.msra.mxu1 %v458_v4  ;;  %v457_v6 = vld [vmem:[%s1258_s9 + $0x70] sm:$0xff]  ;;  %v456_v7 = vld [vmem:[%s1258_s9 + $0x68] sm:$0xff]  ;;  %s1278_s8 = scalar_lea.vmem [#allocation10], %s727_s28  ;;  %s539_s29 = sshll.u32 %s400_s20, 4  ;;  %s540_s29 = int_to_ptr.vmem [resolvable:$true] %s539_s29 }
  0x85   : > { %423 = vmatpush.msra.mxu0 %v416_v1  ;;  %v412_v8 = vld [vmem:[%s1252_s25 + $0x50] sm:$0xff]  ;;  %v455_v9 = vld [vmem:[%s1258_s9 + $0x60] sm:$0xff]  ;;  %v411_v10 = vld [vmem:[%s1252_s25 + $0x48] sm:$0xff]  ;;  %s527_s6 = scalar_lea.sflag [#allocation4], %s1238_s26 }
  0x86   : > { %464 = vmatpush.msra.mxu1 %v457_v6  ;;  %v454_v11 = vld [vmem:[%s1258_s9 + $0x58] sm:$0xff]  ;;  %v410_v12 = vld [vmem:[%s1252_s25 + $0x40] sm:$0xff]  ;;  %v453_v13 = vld [vmem:[%s1258_s9 + $0x50] sm:$0xff] }
  0x87   : > { %424 = vmatpush.msra.mxu0 %v415_v2  ;;  %v409_v14 = vld [vmem:[%s1252_s25 + $0x38] sm:$0xff]  ;;  %v452_v15 = vld [vmem:[%s1258_s9 + $0x48] sm:$0xff]  ;;  %v408_v16 = vld [vmem:[%s1252_s25 + $0x30] sm:$0xff] }
  0x88   : > { %465 = vmatpush.msra.mxu1 %v456_v7  ;;  %v451_v17 = vld [vmem:[%s1258_s9 + $0x40] sm:$0xff]  ;;  %v407_v18 = vld [vmem:[%s1252_s25 + $0x28] sm:$0xff]  ;;  %v450_v19 = vld [vmem:[%s1258_s9 + $0x38] sm:$0xff] }
  0x89   : > { %425 = vmatpush.msra.mxu0 %v414_v3  ;;  %v406_v20 = vld [vmem:[%s1252_s25 + $0x20] sm:$0xff]  ;;  %v449_v21 = vld [vmem:[%s1258_s9 + $0x30] sm:$0xff]  ;;  %v405_v22 = vld [vmem:[%s1252_s25 + $0x18] sm:$0xff]  ;;  %s537_s18 = scalar_lea.hbm %s1393_s23, %s719_s13 }
  0x8a   : > { %466 = vmatpush.msra.mxu1 %v455_v9  ;;  %v448_v23 = vld [vmem:[%s1258_s9 + $0x28] sm:$0xff]  ;;  %v404_v24 = vld [vmem:[%s1252_s25 + $0x10] sm:$0xff]  ;;  %v447_v25 = vld [vmem:[%s1258_s9 + $0x20] sm:$0xff]  ;;  %s541_s17 = sshll.u32 %s537_s18, 4  ;;  %s542_s17 = int_to_ptr.hbm [resolvable:$true] %s541_s17 }
  0x8b   : > { %426 = vmatpush.msra.mxu0 %v413_v5  ;;  %v403_v26 = vld [vmem:[%s1252_s25 + $0x8] sm:$0xff]  ;;  %v446_v27 = vld [vmem:[%s1258_s9 + $0x18] sm:$0xff]  ;;  %v402_v28 = vld [vmem:[%s1252_s25] sm:$0xff]  ;;  %s963_s1 = sshra.s32 %s542_s17, 4  ;;  %s964_s1 = int_to_ptr.hbm [resolvable:$true] %s963_s1 }
  0x8c   : > { %467 = vmatpush.msra.mxu1 %v454_v11  ;;  %v401_v29 = vld [vmem:[%s1244_s15] sm:$0xff]  ;;  %v444_v31 = vld [vmem:[%s1258_s9 + $0x8] sm:$0xff]  ;;  %v443_v32 = vld [vmem:[%s1258_s9] sm:$0xff]  ;;  %s965_s22 = scalar_lea.hbm %s964_s1, 8  ;;  %s969_s15 = scalar_lea.hbm %s1393_s23, 24 }
  0x8d   : > { %427 = vmatpush.msra.mxu0 %v412_v8  ;;  %v445_v30 = vld [vmem:[%s1258_s9 + $0x10] sm:$0xff]  ;;  %v499_v33 = vld [vmem:[%s1260_s14 + $0x78] sm:$0xff]  ;;  %v497_v35 = vld [vmem:[%s1260_s14 + $0x68] sm:$0xff]  ;;  %p966_p6 = scmp.ne.s32.totalorder %s964_s1, %s965_s22  ;;  %p970_p0 = scmp.lt.s32.totalorder %s964_s1, %s1393_s23 }
  0x8e   : > { %468 = vmatpush.msra.mxu1 %v453_v13  ;;  %v498_v34 = vld [vmem:[%s1260_s14 + $0x70] sm:$0xff]  ;;  %504 = vmatpush.msra.mxu2 %v499_v33  ;;  %v496_v36 = vld [vmem:[%s1260_s14 + $0x60] sm:$0xff]  ;;  %v495_v37 = vld [vmem:[%s1260_s14 + $0x58] sm:$0xff]  ;;  %p971_p5 = scmp.lt.s32.totalorder %s969_s15, %s965_s22 }
  0x8f   : > { %428 = vmatpush.msra.mxu0 %v411_v10  ;;  %v494_v38 = vld [vmem:[%s1260_s14 + $0x50] sm:$0xff]  ;;  %v493_v39 = vld [vmem:[%s1260_s14 + $0x48] sm:$0xff]  ;;  %v492_v40 = vld [vmem:[%s1260_s14 + $0x40] sm:$0xff]  ;;  %p967_p12 = pnand %p966_p6, %p1102_p10 }
  0x90   : > { %469 = vmatpush.msra.mxu1 %v452_v15  ;;  %505 = vmatpush.msra.mxu2 %v498_v34  ;;  %v491_v41 = vld [vmem:[%s1260_s14 + $0x38] sm:$0xff]  ;;  %v490_v42 = vld [vmem:[%s1260_s14 + $0x30] sm:$0xff]  ;;  %v489_v43 = vld [vmem:[%s1260_s14 + $0x28] sm:$0xff]  ;;  %p972_p7 = por %p971_p5, %p970_p0 }
  0x91   : > { %429 = vmatpush.msra.mxu0 %v410_v12  ;;  %v488_v44 = vld [vmem:[%s1260_s14 + $0x20] sm:$0xff]  ;;  %v487_v45 = vld [vmem:[%s1260_s14 + $0x18] sm:$0xff]  ;;  %v486_v50 = vld [vmem:[%s1260_s14 + $0x10] sm:$0xff]  ;;  %p968_p1 = pneg %p967_p12 }
  0x92   : > { %470 = vmatpush.msra.mxu1 %v451_v17  ;;  %506 = vmatpush.msra.mxu2 %v497_v35  ;;  %v796_v46 = vld [vmem:[%s1278_s8] ss:$0 sm:$0xff]  ;;  %v485_v51 = vld [vmem:[%s1260_s14 + $0x8] sm:$0xff]  ;;  %v797_v53 = vld [vmem:[%s1278_s8 + $0x1] ss:$0 sm:$0xff] }
  0x93   : > { %430 = vmatpush.msra.mxu0 %v409_v14  ;;  %v484_v52 = vld [vmem:[%s1260_s14] sm:$0xff]  ;;  %p973_p8 = pnand %p972_p7, %p968_p1 }
  0x94   : > { %471 = vmatpush.msra.mxu1 %v450_v19  ;;  %507 = vmatpush.msra.mxu2 %v496_v36  ;;  %v798_v57 = vld [vmem:[%s1278_s8 + $0x2] ss:$0 sm:$0xff] }
  0x95   : > { %431 = vmatpush.msra.mxu0 %v408_v16 }
  0x96   : > { %472 = vmatpush.msra.mxu1 %v449_v21  ;;  %508 = vmatpush.msra.mxu2 %v495_v37 }
  0x97   : > { %432 = vmatpush.msra.mxu0 %v407_v18 }
  0x98   : > { %473 = vmatpush.msra.mxu1 %v448_v23  ;;  %509 = vmatpush.msra.mxu2 %v494_v38 }
  0x99   : > { %433 = vmatpush.msra.mxu0 %v406_v20 }
  0x9a   : > { %474 = vmatpush.msra.mxu1 %v447_v25  ;;  %510 = vmatpush.msra.mxu2 %v493_v39 }
  0x9b   : > { %434 = vmatpush.msra.mxu0 %v405_v22 }
  0x9c   : > { %475 = vmatpush.msra.mxu1 %v446_v27  ;;  %511 = vmatpush.msra.mxu2 %v492_v40 }
  0x9d   : > { %435 = vmatpush.msra.mxu0 %v404_v24 }
  0x9e   : > { %476 = vmatpush.msra.mxu1 %v445_v30  ;;  %512 = vmatpush.msra.mxu2 %v491_v41 }
  0x9f   : > { %436 = vmatpush.msra.mxu0 %v403_v26 }
  0xa0   : > { %477 = vmatpush.msra.mxu1 %v444_v31  ;;  %513 = vmatpush.msra.mxu2 %v490_v42 }
  0xa1   : > { %437 = vmatpush.msra.mxu0 %v402_v28 }
  0xa2   : > { %438 = vmatmul.f32.vlgmr.msra.gmra.mxu0 %v401_v29  ;;  %478 = vmatpush.msra.mxu1 %v443_v32 }
  0xa3   : > { %514 = vmatpush.msra.mxu2 %v489_v43 }
  0xa5   : > { %515 = vmatpush.msra.mxu2 %v488_v44 }
  0xa7   : > { %516 = vmatpush.msra.mxu2 %v487_v45 }
  0xa9   : > { %517 = vmatpush.msra.mxu2 %v486_v50 }
  0xab   : > { %518 = vmatpush.msra.mxu2 %v485_v51 }
  0xad   : > { %519 = vmatpush.msra.mxu2 %v484_v52 }
 0x11f   : > { %v439_v47 = vpop.f32.mrf.mxu0 }
 0x120   : > { %v440_v48 = vadd.f32 %v796_v46, %v439_v47 }
 0x122   : > { %v442_v49 = vmax.f32 %v440_v48, 0.0 }
 0x124   : > { %479 = vmatmul.f32.vlgmr.msra.gmra.mxu1 %v442_v49 }
 0x1a1   : > { %v480_v54 = vpop.f32.mrf.mxu1 }
 0x1a2   : > { %v481_v55 = vadd.f32 %v797_v53, %v480_v54 }
 0x1a4   : > { %v483_v56 = vmax.f32 %v481_v55, 0.0 }
 0x1a6   : > { %520 = vmatmul.f32.vlgmr.msra.gmra.mxu2 %v483_v56 }
 0x229   : > { %v521_v58 = vpop.f32.mrf.mxu2 }
 0x22a   : > { %v522_v59 = vadd.f32 %v798_v57, %v521_v58 }
 0x22c   : > { %v524_v60 = vmax.f32 %v522_v59, 0.0 }
 0x22e   : > { %525 = vst [vmem:[%s400_s20] sm:$0xff] %v524_v60 }
 0x22f   : > { %976 = shalt.err (!%p973_p8)
}
 0x230   : > { %738 = dma.vmem_to_hbm [thread:$0]  (%p1102_p10), %s540_s29, 128, %s542_s17, %s527_s6  }
 0x231 PF: > { %s1395_s26 = sld [smem:[#allocation16_spill]]  ;;  %p761_p9 = scmp.ge.s32.totalorder %s1023_s21, 2 }
 0x233   : > { %p757_p2 = pnand %p761_p9, %p1106_p11 }
 0x235   : > { %p758_p3 = pneg %p757_p2 }
 0x237   : > { %s553_s11 = sand.u32 1, %s1395_s26  }
 0x238   : > { %s554_s25 = scalar_lea.sflag [#allocation4], %s553_s11 }
 0x239   : > { %1006 = dma.done.wait (%p758_p3), %s554_s25, 128  }
 0x23a   : > { %1008 = vsyncadd (%p758_p3), %s554_s25, 4294967168  ;;  %s1397_s21 = sld [smem:[#allocation18_spill]]  ;;  %s1400_s18 = smov %s1015_s19 }
 0x23b   : > { %s1398_s9 = sld [smem:[#allocation17_spill]] }
 0x23c   : > { %s1399_s20 = sld [smem:[#allocation19_spill]] }
 0x240   : > { %p24_p4 = scmp.ge.s32.totalorder %s1397_s21, 5  }
 0x241   : > { %s1401_s19 = smov %s1398_s9 }
 0x242   :  { %26 = sbr.rel (!%p24_p4) target bundleno = 13 (0xd), region = 133 }
 0x247   :  { %560 = vsyncpa [#allocation3], 1 }
 0x248   :  { %562 = vsyncpa [#allocation3 + $0x1], 1 }
 0x249   :  { %563 = vsyncpa [#allocation6], 1 }
 0x24a   :  { %565 = vsyncpa [#allocation6 + $0x1], 1 }
 0x24b   :  { %566 = vsyncpa [#allocation9], 1 }
 0x24c   :  { %568 = vsyncpa [#allocation9 + $0x1], 1 }
 0x24d   :  { %569 = vsyncpa [#allocation4], 1 }
 0x24e   :  { %571 = vsyncpa [#allocation4 + $0x1], 1 }

</bundles_post_ra>
